<compile_context>
chip_gen: v7x
topology: tpu7x:2x2x1
jax: 0.10.0
libtpu: 0.0.40
codegen_flags: <defaults>
</compile_context>

<pallas_src>
import functools

import jax
import jax.numpy as jnp
from jax import lax
from jax.experimental import pallas as pl
from jax.experimental.pallas import tpu as pltpu


def _round_up(v, m):
    return (v + m - 1) // m * m


def _mask_k_tail(x_blk, w_blk, *, k_rem, tk):
    """Zero the out-of-range K columns of x / K rows of w in the last K block.

    Only emitted when K is not a multiple of tk (k_rem != 0); this replaces
    wrapper-side zero-padding of K (which would cost a full HBM pass)."""
    if k_rem == 0:
        return x_blk, w_blk
    is_last = pl.program_id(2) == pl.num_programs(2) - 1
    valid = jnp.where(is_last, k_rem, tk)
    col = lax.broadcasted_iota(jnp.int32, x_blk.shape, 1)
    row = lax.broadcasted_iota(jnp.int32, w_blk.shape, 0)
    x_blk = jnp.where(col < valid, x_blk, jnp.zeros_like(x_blk))
    w_blk = jnp.where(row < valid, w_blk, jnp.zeros_like(w_blk))
    return x_blk, w_blk


def _gemm_kernel_f32out(x_ref, w_ref, b_ref, o_ref, *, k_rem, tk):
    """f32 output path: accumulate directly into o_ref.

    The output block index is k-invariant, so it stays resident in VMEM across
    the K (reduction, 'arbitrary') grid axis -> no scratch accumulator and no
    epilogue copy.  Bias broadcast is the k==0 init."""
    k = pl.program_id(2)

    @pl.when(k == 0)
    def _():
        o_ref[...] = jnp.broadcast_to(b_ref[...], o_ref.shape)

    x_blk, w_blk = _mask_k_tail(x_ref[...], w_ref[...], k_rem=k_rem, tk=tk)
    o_ref[...] += jnp.dot(x_blk, w_blk, preferred_element_type=jnp.float32)


def _gemm_kernel_acc(x_ref, w_ref, b_ref, o_ref, acc_ref, *, k_rem, tk):
    """Non-f32 (e.g. bf16) output path: f32 scratch accumulator + cast epilogue."""
    k = pl.program_id(2)

    @pl.when(k == 0)
    def _():
        acc_ref[...] = jnp.broadcast_to(
            b_ref[...].astype(jnp.float32), acc_ref.shape
        )

    x_blk, w_blk = _mask_k_tail(x_ref[...], w_ref[...], k_rem=k_rem, tk=tk)
    acc_ref[...] += jnp.dot(x_blk, w_blk, preferred_element_type=jnp.float32)

    @pl.when(k == pl.num_programs(2) - 1)
    def _():
        o_ref[...] = acc_ref[...].astype(o_ref.dtype)


def _tpu_defaults():
    """Generation-aware tile defaults + VMEM budget."""
    kind = ""
    try:
        kind = jax.devices()[0].device_kind.lower()
    except Exception:
        pass
    vmem_cap = (64 << 20) if "v7" in kind else (128 << 20)
    try:
        vmem_cap = int(pltpu.get_tpu_info().vmem_capacity_bytes)
    except Exception:
        pass
    if "v5e" in kind or "v5 lite" in kind or "v5lite" in kind:
        # v5e: 197 TF/s vs ~0.8 TB/s -> 512x512 (256 flop/byte) already MXU-bound.
        tm, tn, tk = 512, 512, 1024
    else:
        # v6e/v7x: need ~620-670 flop/byte; 1024x2048 gives ~683.
        # VMEM footprint ~22 MiB (2x1 MiB x, 2x2 MiB w, 2x8 MiB f32 out) -> fits
        # v7x's 64 MiB with headroom.
        tm, tn, tk = 1024, 2048, 512
    # Leave ~8 MiB headroom for compiler-internal scratch; never claim the whole
    # physical VMEM (important on v7x where physical == 64 MiB).
    vmem_limit = max(32 << 20, min(vmem_cap - (8 << 20), 100 << 20))
    return tm, tn, tk, vmem_limit


@functools.partial(jax.jit, static_argnames=("tm", "tn", "tk"))
def gemm(x, w_t, b, *, tm=None, tn=None, tk=None):
    """y = x @ w_t + b with x:(M,K), w_t:(K,N), b:(N,).

    bf16 inputs / f32 accumulate.  No padding of M/N (partial boundary blocks),
    in-kernel masking of a ragged K tail, no output slicing.
    """
    M, K = x.shape
    Kw, N = w_t.shape
    assert K == Kw and b.shape == (N,)

    d_tm, d_tn, d_tk, vmem_limit = _tpu_defaults()
    tm = d_tm if tm is None else tm
    tn = d_tn if tn is None else tn
    tk = d_tk if tk is None else tk

    # GEMV-like (tiny M): per-step work is tiny, so deepen K to amortize the
    # ~0.35us grid-step overhead and keep the weight stream dense.
    if _round_up(M, 16) <= 64:
        tk = max(tk, 2048)

    # Clamp tiles to the problem size. tn/tk rounded to 256 when possible so the
    # 2x256x256 MXU (v6e/v7x) runs fully occupied; 16-row sublane alignment for bf16.
    mult_n = 256 if N >= 256 else 128
    mult_k = 256 if K >= 256 else 128
    tm_e = max(16, min(tm, _round_up(M, 16)))
    tn_e = max(mult_n, min(tn, _round_up(N, mult_n)))
    tk_e = max(mult_k, min(tk, _round_up(K, mult_k)))

    out_dtype = x.dtype
    use_scratch = out_dtype != jnp.float32
    in_bytes = 2  # bf16 inputs
    out_bytes = out_dtype.itemsize

    def footprint(tm_, tn_, tk_):
        return (2 * tm_ * tk_ * in_bytes          # x, double-buffered
                + 2 * tk_ * tn_ * in_bytes        # w, double-buffered
                + 2 * tn_ * 4                     # bias
                + 2 * tm_ * tn_ * out_bytes       # output block
                + (tm_ * tn_ * 4 if use_scratch else 0))

    # Shrink tiles if they would blow the per-generation VMEM budget.
    while footprint(tm_e, tn_e, tk_e) > int(0.9 * vmem_limit):
        if tn_e >= 2 * mult_n and tn_e >= tm_e:
            tn_e //= 2
        elif tm_e >= 32:
            tm_e //= 2
        elif tk_e >= 2 * mult_k:
            tk_e //= 2
        else:
            break

    grid = (pl.cdiv(M, tm_e), pl.cdiv(N, tn_e), pl.cdiv(K, tk_e))
    k_rem = K % tk_e  # ragged K tail handled in-kernel (no HBM padding pass)

    # Skip the bf16 cast when inputs already are bf16 (avoids an extra HBM pass).
    xb = x if x.dtype == jnp.bfloat16 else x.astype(jnp.bfloat16)
    wb = w_t if w_t.dtype == jnp.bfloat16 else w_t.astype(jnp.bfloat16)
    b2d = b.astype(jnp.float32).reshape(1, N)

    if use_scratch:
        kernel = functools.partial(_gemm_kernel_acc, k_rem=k_rem, tk=tk_e)
        scratch = [pltpu.VMEM((tm_e, tn_e), jnp.float32)]
    else:
        kernel = functools.partial(_gemm_kernel_f32out, k_rem=k_rem, tk=tk_e)
        scratch = []

    cost = pl.CostEstimate(
        flops=2 * M * N * K,
        transcendentals=0,
        bytes_accessed=(M * K + K * N) * in_bytes + N * 4 + M * N * out_bytes,
    )

    return pl.pallas_call(
        kernel,
        out_shape=jax.ShapeDtypeStruct((M, N), out_dtype),
        grid_spec=pltpu.PrefetchScalarGridSpec(
            num_scalar_prefetch=0,
            grid=grid,
            in_specs=[
                pl.BlockSpec((tm_e, tk_e), lambda i, j, k: (i, k)),
                pl.BlockSpec((tk_e, tn_e), lambda i, j, k: (k, j)),
                # Bias block index is k-invariant: DMA'd only when j changes.
                pl.BlockSpec((1, tn_e), lambda i, j, k: (0, j)),
            ],
            out_specs=pl.BlockSpec((tm_e, tn_e), lambda i, j, k: (i, j)),
            scratch_shapes=scratch,
        ),
        compiler_params=pltpu.CompilerParams(
            dimension_semantics=("parallel", "parallel", "arbitrary"),
            vmem_limit_bytes=int(vmem_limit),
        ),
        cost_estimate=cost,
    )(xb, wb, b2d)


if __name__ == "__main__":
    key = jax.random.PRNGKey(0)
    kx, kw, kb = jax.random.split(key, 3)

    # --- Test 1: small aligned shapes, multi-step K reduction (explicit tiles).
    M, K, N = 16, 384, 128
    x = jax.random.normal(kx, (M, K), dtype=jnp.float32)
    bound = 1.0 / (K ** 0.5)  # torch.nn.Linear-style init bounds
    weight = jax.random.uniform(kw, (N, K), minval=-bound, maxval=bound,
                                dtype=jnp.float32)
    bias = jax.random.uniform(kb, (N,), minval=-bound, maxval=bound,
                              dtype=jnp.float32)
    y = gemm(x, weight.T, bias, tm=16, tn=128, tk=128)  # grid_k = 3
    jax.block_until_ready(y)

    y_bf16 = jnp.dot(x.astype(jnp.bfloat16), weight.T.astype(jnp.bfloat16),
                     preferred_element_type=jnp.float32) + bias
    assert jnp.allclose(y, y_bf16, atol=2e-3, rtol=2e-3), "mismatch vs bf16 ref"
    y_ref = x @ weight.T + bias
    assert jnp.allclose(y, y_ref, atol=5e-2, rtol=5e-2), "mismatch vs f32 ref"

    # --- Test 2: ragged M/N/K with auto (generation-aware) tiles.
    M2, K2, N2 = 10, 200, 200
    x2 = jax.random.normal(kx, (M2, K2), dtype=jnp.float32)
    w2 = jax.random.uniform(kw, (N2, K2), minval=-0.1, maxval=0.1,
                            dtype=jnp.float32)
    b2 = jax.random.uniform(kb, (N2,), minval=-0.1, maxval=0.1,
                            dtype=jnp.float32)
    y2 = gemm(x2, w2.T, b2)
    jax.block_until_ready(y2)
    y2_ref = x2 @ w2.T + b2
    assert jnp.allclose(y2, y2_ref, atol=5e-2, rtol=5e-2), "mismatch ragged shape"

    # --- Test 3: ragged K across multiple K steps (exercises in-kernel K mask).
    M3, K3, N3 = 16, 200, 128
    x3 = jax.random.normal(kx, (M3, K3), dtype=jnp.float32)
    bound3 = 1.0 / (K3 ** 0.5)
    w3 = jax.random.uniform(kw, (N3, K3), minval=-bound3, maxval=bound3,
                            dtype=jnp.float32)
    b3 = jax.random.uniform(kb, (N3,), minval=-bound3, maxval=bound3,
                            dtype=jnp.float32)
    y3 = gemm(x3, w3.T, b3, tm=16, tn=128, tk=128)  # grid_k = 2, k_rem = 72
    jax.block_until_ready(y3)
    y3_ref = x3 @ w3.T + b3
    assert jnp.allclose(y3, y3_ref, atol=5e-2, rtol=5e-2), "mismatch ragged K"

    print("KERNEL_OK")
</pallas_src>

<mosaic_0001>
module attributes {stable_mosaic.version = 11 : i64} {
  func.func @_gemm_kernel_f32out(%arg0: i32, %arg1: i32, %arg2: i32, %arg3: memref<16x512xbf16, #tpu.memory_space<vmem>>, %arg4: memref<512x128xbf16, #tpu.memory_space<vmem>>, %arg5: memref<1x128xf32, #tpu.memory_space<vmem>>, %arg6: memref<16x128xf32, #tpu.memory_space<vmem>>) attributes {dimension_semantics = [#tpu.dimension_semantics<parallel>, #tpu.dimension_semantics<parallel>, #tpu.dimension_semantics<arbitrary>], iteration_bounds = array<i64: 1, 1, 1>, scalar_prefetch = 0 : i64, scratch_operands = 0 : i64, tpu.core_type = #tpu.core_type<tc>, window_params = [{transform_indices = @transform_0, window_bounds = array<i64: 16, 512>}, {transform_indices = @transform_1, window_bounds = array<i64: 512, 128>}, {transform_indices = @transform_2, window_bounds = array<i64: 1, 128>}, {transform_indices = @transform_3, window_bounds = array<i64: 16, 128>}]} {
    %c0_i32 = arith.constant 0 : i32
    %0 = arith.cmpi eq, %arg2, %c0_i32 : i32
    %1 = arith.extui %0 : i1 to i32
    %c0_i32_0 = arith.constant 0 : i32
    %2 = arith.cmpi ne, %1, %c0_i32_0 : i32
    scf.if %2 {
      %c0_11 = arith.constant 0 : index
      %c0_12 = arith.constant 0 : index
      %21 = vector.load %arg5[%c0_11, %c0_12] : memref<1x128xf32, #tpu.memory_space<vmem>>, vector<1x128xf32>
      %22 = vector.shape_cast %21 : vector<1x128xf32> to vector<1x128xf32>
      %23 = vector.broadcast %22 : vector<1x128xf32> to vector<16x128xf32>
      %c0_13 = arith.constant 0 : index
      %c0_14 = arith.constant 0 : index
      %24 = vector.load %arg6[%c0_13, %c0_14] : memref<16x128xf32, #tpu.memory_space<vmem>>, vector<16x128xf32>
      tpu.vector_store %arg6[%c0_13, %c0_14], %23 {strides = array<i32>} : memref<16x128xf32, #tpu.memory_space<vmem>>, vector<16x128xf32>,
    } else {
    }
    %c0 = arith.constant 0 : index
    %c0_1 = arith.constant 0 : index
    %3 = vector.load %arg3[%c0, %c0_1] : memref<16x512xbf16, #tpu.memory_space<vmem>>, vector<16x512xbf16>
    %c0_2 = arith.constant 0 : index
    %c0_3 = arith.constant 0 : index
    %4 = vector.load %arg4[%c0_2, %c0_3] : memref<512x128xbf16, #tpu.memory_space<vmem>>, vector<512x128xbf16>
    %c0_i32_4 = arith.constant 0 : i32
    %5 = arith.cmpi eq, %arg2, %c0_i32_4 : i32
    %c384_i32 = arith.constant 384 : i32
    %c512_i32 = arith.constant 512 : i32
    %6 = arith.select %5, %c384_i32, %c512_i32 : i32
    %7 = tpu.iota {dimensions = array<i32: 1>} : vector<16x512xi32>
    %8 = tpu.iota {dimensions = array<i32: 0>} : vector<512x128xi32>
    %9 = vector.broadcast %6 : i32 to vector<16x512xi32>
    %10 = arith.cmpi slt, %7, %9 : vector<16x512xi32>
    %cst = arith.constant 0.000000e+00 : bf16
    %11 = vector.broadcast %cst : bf16 to vector<16x512xbf16>
    %12 = arith.select %10, %3, %11 : vector<16x512xi1>, vector<16x512xbf16>
    %13 = vector.broadcast %6 : i32 to vector<512x128xi32>
    %14 = arith.cmpi slt, %8, %13 : vector<512x128xi32>
    %cst_5 = arith.constant 0.000000e+00 : bf16
    %15 = vector.broadcast %cst_5 : bf16 to vector<512x128xbf16>
    %16 = arith.select %14, %4, %15 : vector<512x128xi1>, vector<512x128xbf16>
    %c0_6 = arith.constant 0 : index
    %c0_7 = arith.constant 0 : index
    %17 = vector.load %arg6[%c0_6, %c0_7] : memref<16x128xf32, #tpu.memory_space<vmem>>, vector<16x128xf32>
    %cst_8 = arith.constant dense<0.000000e+00> : vector<16x128xf32>
    %18 = tpu.matmul %12, %16, %cst_8 {dimension_numbers = #tpu.dot_dimension_numbers<[1], [0], [0], [1], [0, 0, 1, 1], [], []>} : vector<16x512xbf16>, vector<512x128xbf16>, vector<16x128xf32> -> vector<16x128xf32>
    %19 = arith.addf %17, %18 : vector<16x128xf32>
    %c0_9 = arith.constant 0 : index
    %c0_10 = arith.constant 0 : index
    %20 = vector.load %arg6[%c0_9, %c0_10] : memref<16x128xf32, #tpu.memory_space<vmem>>, vector<16x128xf32>
    tpu.vector_store %arg6[%c0_9, %c0_10], %19 {strides = array<i32>} : memref<16x128xf32, #tpu.memory_space<vmem>>, vector<16x128xf32>,
    return
  }
  func.func @transform_0(%arg0: i32, %arg1: i32, %arg2: i32) -> (i32, i32) {
    %c0_i32 = arith.constant 0 : i32
    return %arg0, %arg2 : i32, i32
  }
  func.func @transform_1(%arg0: i32, %arg1: i32, %arg2: i32) -> (i32, i32) {
    %c0_i32 = arith.constant 0 : i32
    return %arg2, %arg1 : i32, i32
  }
  func.func @transform_2(%arg0: i32, %arg1: i32, %arg2: i32) -> (i32, i32) {
    %c0_i32 = arith.constant 0 : i32
    %c0_i32_0 = arith.constant 0 : i32
    return %c0_i32, %arg1 : i32, i32
  }
  func.func @transform_3(%arg0: i32, %arg1: i32, %arg2: i32) -> (i32, i32) {
    %c0_i32 = arith.constant 0 : i32
    return %arg0, %arg1 : i32, i32
  }
}

</mosaic_0001>

<bundles_post_ra>
// kernel: gemm.1
= control target key start
LH: loop header
LB: loop body
LE: loop exit
PB: predicated region body
PF: predicated region fallthrough
CT: control target
= control target key end

     0   :  { %8 = vsyncpa [#allocation3], 0  ;;  %s1151_s0 = inlined_call_operand.hbm [shape: bf16[16,384], index: 0, kind: input, shape index: {}]   ;;  %s1152_s1 = inlined_call_operand.hbm [shape: bf16[384,128], index: 1, kind: input, shape index: {}]   ;;  %s1153_s2 = inlined_call_operand.hbm [shape: f32[1,128], index: 2, kind: input, shape index: {}]   ;;  %s1154_s3 = inlined_call_operand.hbm [shape: f32[16,128], index: 3, kind: output, shape index: {}]  }
   0x1   :  { %9 = vsyncpa [#allocation6], 0 }
   0x2   :  { %10 = vsyncpa [#allocation4], 0 }
   0x3   :  { %15 = vsyncadd [#allocation3], 128  ;;  %s916_s12 = smov [#allocation2]   ;;  %s822_s16 = scalar_lea.hbm %s1151_s0, 384 }
   0x4   :  { %s16_s13 = sshll.u32 %s916_s12, 4  ;;  %p823_p0 = scmp.ne.s32.totalorder %s1151_s0, %s822_s16  ;;  %s17_s13 = int_to_ptr.vmem [resolvable:$true] %s16_s13 }
   0x5   :  { %p826_p1 = scmp.lt.u32.totalorder %s822_s16, %s1151_s0 }
   0x7   :  { %p828_p2 = pnand %p826_p1, %p823_p0 }
   0x9   :  { %831 = shalt.err (!%p828_p2)
}
   0xa   :  { %s832_s21 = scalar_lea.vmem %s17_s13, 384  ;;  %s836_s22 = scalar_lea.vmem %s17_s13, 512 }
   0xb   :  { %p833_p3 = scmp.ne.s32.totalorder %s17_s13, %s832_s21  ;;  %p837_p4 = scmp.lt.s32.totalorder %s17_s13, %s17_s13 }
   0xc   :  { %p838_p5 = scmp.lt.s32.totalorder %s836_s22, %s832_s21 }
   0xe   :  { %p839_p6 = por %p838_p5, %p837_p4 }
  0x10   :  { %p840_p7 = pnand %p839_p6, %p833_p3 }
  0x12   :  { %843 = shalt.err (!%p840_p7)
}
  0x13   :  { %s917_s23 = smov 192   ;;  %s918_s24 = smov 256  }
  0x14   :  { %s919_s25 = smov 12  }
  0x15   :  { %22 = dma.hbm_to_vmem [thread:$0]  %s1151_s0, 384, %s17_s13, [#allocation3], %s917_s23, %s918_s24, %s919_s25  }
  0x16   :  { %27 = vsyncadd [#allocation6], 1024  ;;  %s920_s28 = smov [#allocation5]   ;;  %s844_s5 = scalar_lea.hbm %s1152_s1, 3072 }
  0x17   :  { %s28_s29 = sshll.u32 %s920_s28, 4  ;;  %p845_p8 = scmp.ne.s32.totalorder %s1152_s1, %s844_s5  ;;  %s29_s29 = int_to_ptr.vmem [resolvable:$true] %s28_s29 }
  0x18   :  { %p848_p9 = scmp.lt.u32.totalorder %s844_s5, %s1152_s1 }
  0x1a   :  { %p850_p10 = pnand %p848_p9, %p845_p8 }
  0x1c   :  { %853 = shalt.err (!%p850_p10)
}
  0x1d   :  { %s854_s10 = scalar_lea.vmem %s29_s29, 3072  ;;  %s858_s0 = scalar_lea.vmem %s29_s29, 4096 }
  0x1e   :  { %p855_p11 = scmp.ne.s32.totalorder %s29_s29, %s854_s10  ;;  %p859_p12 = scmp.lt.s32.totalorder %s29_s29, %s29_s29 }
  0x1f   :  { %p860_p13 = scmp.lt.s32.totalorder %s858_s0, %s854_s10 }
  0x21   :  { %p861_p0 = por %p860_p13, %p859_p12 }
  0x23   :  { %p862_p1 = pnand %p861_p0, %p855_p11 }
  0x25   :  { %865 = shalt.err (!%p862_p1)
}
  0x26   :  { %s921_s11 = smov 64   ;;  %s922_s12 = smov 4  }
  0x27   :  { %34 = dma.hbm_to_vmem [thread:$0]  %s1152_s1, 3072, %s29_s29, [#allocation6], %s921_s11, %s921_s11, %s922_s12  }
  0x28   :  { %s923_s15 = smov [#allocation7]   ;;  %s866_s19 = scalar_lea.hbm %s1153_s2, 16 }
  0x29   :  { %s41_s16 = sshll.u32 %s923_s15, 4  ;;  %p867_p2 = scmp.ne.s32.totalorder %s1153_s2, %s866_s19  ;;  %s42_s16 = int_to_ptr.vmem [resolvable:$true] %s41_s16 }
  0x2a   :  { %p870_p3 = scmp.lt.u32.totalorder %s866_s19, %s1153_s2 }
  0x2c   :  { %p872_p4 = pnand %p870_p3, %p867_p2 }
  0x2e   :  { %875 = shalt.err (!%p872_p4)
}
  0x2f   :  { %s876_s24 = scalar_lea.vmem %s42_s16, 16  ;;  %s880_s1 = scalar_lea.vmem %s42_s16, 32 }
  0x30   :  { %p877_p5 = scmp.ne.s32.totalorder %s42_s16, %s876_s24  ;;  %p881_p6 = scmp.lt.s32.totalorder %s42_s16, %s42_s16 }
  0x31   :  { %p882_p7 = scmp.lt.s32.totalorder %s880_s1, %s876_s24 }
  0x33   :  { %p883_p8 = por %p882_p7, %p881_p6 }
  0x35   :  { %p884_p9 = pnand %p883_p8, %p877_p5 }
  0x37   :  { %887 = shalt.err (!%p884_p9)
}
  0x38   :  { %44 = dma.hbm_to_vmem [thread:$0]  %s1153_s2, 16, %s42_s16, [#allocation6]  }
  0x39   :  { %910 = dma.done.wait [#allocation3], 512  }
  0x3a   :  { %911 = vsyncadd [#allocation3], 4294966784 }
  0x3b   :  { %912 = dma.done.wait [#allocation6], 4112  }
  0x3c   :  { %913 = vsyncadd [#allocation6], 4294963184  ;;  %vm924_vm0 = vmmov 1   ;;  %vm925_vm2 = vmmov 0   ;;  %v88_v2 = vld [vmem:[#allocation5 + $0x40] sm:$0xf] }
  0x3d   :  { %vm987_vm1 = vmpackc.low %vm924_vm0, %vm924_vm0  ;;  %v89_v3 = vld [vmem:[#allocation5 + $0x44] sm:$0xf]  ;;  %v120_v4 = vld [vmem:[#allocation5 + $0xc0] sm:$0xf]  ;;  %s926_s2 = smov [#allocation8]  }
  0x3e   :  { %vm993_vm3 = vmpackc.low %vm925_vm2, %vm925_vm2  ;;  %v362_v5 = vsel %vm987_vm1, %v88_v2, 0  ;;  %v363_v6 = vsel %vm987_vm1, %v89_v3, 0  ;;  %v121_v7 = vld [vmem:[#allocation5 + $0xc4] sm:$0xf]  ;;  %v72_v11 = vld [vmem:[#allocation5] sm:$0xf] }
  0x3f   :  { %v394_v8 = vsel %vm993_vm3, %v120_v4, 0  ;;  %v741_v9 = vcombine.low %v362_v5, %v363_v6  ;;  %v395_v10 = vsel %vm993_vm3, %v121_v7, 0  ;;  %v73_v12 = vld [vmem:[#allocation5 + $0x4] sm:$0xf]  ;;  %v346_v14 = vsel %vm987_vm1, %v72_v11, 0  ;;  %vm1119_vm4 = vmpackc.low %vm925_vm2, %vm924_vm0  ;;  %s715_s27 = sshll.u32 %s926_s2, 4  ;;  %s716_s27 = int_to_ptr.vmem [resolvable:$true] %s715_s27 }
  0x40   :  { %v757_v13 = vcombine.low %v394_v8, %v395_v10  ;;  %v347_v15 = vsel %vm987_vm1, %v73_v12, 0  ;;  %v104_v16 = vld [vmem:[#allocation5 + $0x80] sm:$0xf]  ;;  %v105_v17 = vld [vmem:[#allocation5 + $0x84] sm:$0xf]  ;;  %s888_s28 = scalar_lea.vmem %s716_s27, 256  ;;  %p893_p11 = scmp.lt.s32.totalorder %s716_s27, %s716_s27 }
  0x41   :  { %765 = vmatprep.subr.bf16.mxu0 %v741_v9  ;;  %v733_v18 = vcombine.low %v346_v14, %v347_v15  ;;  %v378_v19 = vsel %vm987_vm1, %v104_v16, 0  ;;  %v379_v20 = vsel %vm987_vm1, %v105_v17, 0  ;;  %v90_v21 = vld [vmem:[#allocation5 + $0x48] sm:$0xf]  ;;  %v91_v22 = vld [vmem:[#allocation5 + $0x4c] sm:$0xf]  ;;  %p889_p10 = scmp.ne.s32.totalorder %s716_s27, %s888_s28  ;;  %p894_p12 = scmp.lt.s32.totalorder %s888_s28, %s888_s28 }
  0x42   :  { %787 = vmatprep.subr.bf16.mxu1 %v757_v13  ;;  %v749_v23 = vcombine.low %v378_v19, %v379_v20  ;;  %v364_v24 = vsel %vm987_vm1, %v90_v21, 0  ;;  %v365_v25 = vsel %vm987_vm1, %v91_v22, 0  ;;  %v122_v26 = vld [vmem:[#allocation5 + $0xc8] sm:$0xf]  ;;  %v123_v27 = vld [vmem:[#allocation5 + $0xcc] sm:$0xf] }
  0x43   :  { %766 = vmatpush3.bf16.msra.mxu0 %v733_v18  ;;  %v742_v28 = vcombine.low %v364_v24, %v365_v25  ;;  %v396_v29 = vsel %vm993_vm3, %v122_v26, 0  ;;  %v397_v30 = vsel %vm993_vm3, %v123_v27, 0  ;;  %v74_v31 = vld [vmem:[#allocation5 + $0x8] sm:$0xf]  ;;  %v75_v32 = vld [vmem:[#allocation5 + $0xc] sm:$0xf]  ;;  %p895_p13 = por %p894_p12, %p893_p11 }
  0x44   :  { %788 = vmatpush3.bf16.msra.mxu1 %v749_v23  ;;  %v758_v33 = vcombine.low %v396_v29, %v397_v30  ;;  %v348_v34 = vsel %vm987_vm1, %v74_v31, 0  ;;  %v349_v35 = vsel %vm987_vm1, %v75_v32, 0  ;;  %v106_v36 = vld [vmem:[#allocation5 + $0x88] sm:$0xf]  ;;  %v107_v37 = vld [vmem:[#allocation5 + $0x8c] sm:$0xf] }
  0x45   :  { %767 = vmatprep.subr.bf16.mxu0 %v742_v28  ;;  %v734_v38 = vcombine.low %v348_v34, %v349_v35  ;;  %v380_v39 = vsel %vm987_vm1, %v106_v36, 0  ;;  %v381_v40 = vsel %vm987_vm1, %v107_v37, 0  ;;  %v92_v41 = vld [vmem:[#allocation5 + $0x50] sm:$0xf]  ;;  %v93_v42 = vld [vmem:[#allocation5 + $0x54] sm:$0xf]  ;;  %p896_p0 = pnand %p895_p13, %p889_p10 }
  0x46   :  { %789 = vmatprep.subr.bf16.mxu1 %v758_v33  ;;  %v750_v43 = vcombine.low %v380_v39, %v381_v40  ;;  %v366_v44 = vsel %vm987_vm1, %v92_v41, 0  ;;  %v367_v45 = vsel %vm987_vm1, %v93_v42, 0  ;;  %v124_v46 = vld [vmem:[#allocation5 + $0xd0] sm:$0xf]  ;;  %v125_v47 = vld [vmem:[#allocation5 + $0xd4] sm:$0xf] }
  0x47   :  { %768 = vmatpush3.bf16.msra.mxu0 %v734_v38  ;;  %v743_v48 = vcombine.low %v366_v44, %v367_v45  ;;  %v398_v49 = vsel %vm993_vm3, %v124_v46, 0  ;;  %v399_v50 = vsel %vm993_vm3, %v125_v47, 0  ;;  %v76_v51 = vld [vmem:[#allocation5 + $0x10] sm:$0xf]  ;;  %v77_v52 = vld [vmem:[#allocation5 + $0x14] sm:$0xf] }
  0x48   :  { %790 = vmatpush3.bf16.msra.mxu1 %v750_v43  ;;  %v759_v53 = vcombine.low %v398_v49, %v399_v50  ;;  %v350_v54 = vsel %vm987_vm1, %v76_v51, 0  ;;  %v351_v55 = vsel %vm987_vm1, %v77_v52, 0  ;;  %v108_v56 = vld [vmem:[#allocation5 + $0x90] sm:$0xf]  ;;  %v109_v57 = vld [vmem:[#allocation5 + $0x94] sm:$0xf] }
  0x49   :  { %769 = vmatprep.subr.bf16.mxu0 %v743_v48  ;;  %v735_v58 = vcombine.low %v350_v54, %v351_v55  ;;  %v382_v59 = vsel %vm987_vm1, %v108_v56, 0  ;;  %v383_v60 = vsel %vm987_vm1, %v109_v57, 0  ;;  %v94_v61 = vld [vmem:[#allocation5 + $0x58] sm:$0xf]  ;;  %v95_v62 = vld [vmem:[#allocation5 + $0x5c] sm:$0xf] }
  0x4a   :  { %791 = vmatprep.subr.bf16.mxu1 %v759_v53  ;;  %v751_v63 = vcombine.low %v382_v59, %v383_v60  ;;  %v368_v2 = vsel %vm987_vm1, %v94_v61, 0  ;;  %v369_v3 = vsel %vm987_vm1, %v95_v62, 0  ;;  %v126_v4 = vld [vmem:[#allocation5 + $0xd8] sm:$0xf]  ;;  %v127_v5 = vld [vmem:[#allocation5 + $0xdc] sm:$0xf] }
  0x4b   :  { %770 = vmatpush3.bf16.msra.mxu0 %v735_v58  ;;  %v744_v6 = vcombine.low %v368_v2, %v369_v3  ;;  %v400_v7 = vsel %vm993_vm3, %v126_v4, 0  ;;  %v401_v8 = vsel %vm993_vm3, %v127_v5, 0  ;;  %v78_v9 = vld [vmem:[#allocation5 + $0x18] sm:$0xf]  ;;  %v79_v10 = vld [vmem:[#allocation5 + $0x1c] sm:$0xf] }
  0x4c   :  { %792 = vmatpush3.bf16.msra.mxu1 %v751_v63  ;;  %v760_v11 = vcombine.low %v400_v7, %v401_v8  ;;  %v352_v12 = vsel %vm987_vm1, %v78_v9, 0  ;;  %v353_v13 = vsel %vm987_vm1, %v79_v10, 0  ;;  %v110_v14 = vld [vmem:[#allocation5 + $0x98] sm:$0xf]  ;;  %v111_v15 = vld [vmem:[#allocation5 + $0x9c] sm:$0xf] }
  0x4d   :  { %771 = vmatprep.subr.bf16.mxu0 %v744_v6  ;;  %v736_v16 = vcombine.low %v352_v12, %v353_v13  ;;  %v384_v17 = vsel %vm987_vm1, %v110_v14, 0  ;;  %v385_v18 = vsel %vm987_vm1, %v111_v15, 0  ;;  %v96_v19 = vld [vmem:[#allocation5 + $0x60] sm:$0xf]  ;;  %v97_v20 = vld [vmem:[#allocation5 + $0x64] sm:$0xf] }
  0x4e   :  { %793 = vmatprep.subr.bf16.mxu1 %v760_v11  ;;  %v752_v21 = vcombine.low %v384_v17, %v385_v18  ;;  %v370_v22 = vsel %vm987_vm1, %v96_v19, 0  ;;  %v371_v23 = vsel %vm987_vm1, %v97_v20, 0  ;;  %v128_v24 = vld [vmem:[#allocation5 + $0xe0] sm:$0xf]  ;;  %v129_v25 = vld [vmem:[#allocation5 + $0xe4] sm:$0xf] }
  0x4f   :  { %772 = vmatpush3.bf16.msra.mxu0 %v736_v16  ;;  %v745_v26 = vcombine.low %v370_v22, %v371_v23  ;;  %v402_v27 = vsel %vm993_vm3, %v128_v24, 0  ;;  %v403_v28 = vsel %vm993_vm3, %v129_v25, 0  ;;  %v80_v29 = vld [vmem:[#allocation5 + $0x20] sm:$0xf]  ;;  %v81_v30 = vld [vmem:[#allocation5 + $0x24] sm:$0xf] }
  0x50   :  { %794 = vmatpush3.bf16.msra.mxu1 %v752_v21  ;;  %v761_v31 = vcombine.low %v402_v27, %v403_v28  ;;  %v354_v32 = vsel %vm987_vm1, %v80_v29, 0  ;;  %v355_v33 = vsel %vm987_vm1, %v81_v30, 0  ;;  %v112_v34 = vld [vmem:[#allocation5 + $0xa0] sm:$0xf]  ;;  %v113_v35 = vld [vmem:[#allocation5 + $0xa4] sm:$0xf] }
  0x51   :  { %773 = vmatprep.subr.bf16.mxu0 %v745_v26  ;;  %v737_v36 = vcombine.low %v354_v32, %v355_v33  ;;  %v386_v37 = vsel %vm987_vm1, %v112_v34, 0  ;;  %v387_v38 = vsel %vm987_vm1, %v113_v35, 0  ;;  %v98_v39 = vld [vmem:[#allocation5 + $0x68] sm:$0xf]  ;;  %v99_v40 = vld [vmem:[#allocation5 + $0x6c] sm:$0xf] }
  0x52   :  { %795 = vmatprep.subr.bf16.mxu1 %v761_v31  ;;  %v753_v41 = vcombine.low %v386_v37, %v387_v38  ;;  %v372_v42 = vsel %vm987_vm1, %v98_v39, 0  ;;  %v373_v43 = vsel %vm987_vm1, %v99_v40, 0  ;;  %v130_v44 = vld [vmem:[#allocation5 + $0xe8] sm:$0xf]  ;;  %v131_v45 = vld [vmem:[#allocation5 + $0xec] sm:$0xf] }
  0x53   :  { %774 = vmatpush3.bf16.msra.mxu0 %v737_v36  ;;  %v746_v46 = vcombine.low %v372_v42, %v373_v43  ;;  %v404_v47 = vsel %vm993_vm3, %v130_v44, 0  ;;  %v405_v48 = vsel %vm993_vm3, %v131_v45, 0  ;;  %v82_v49 = vld [vmem:[#allocation5 + $0x28] sm:$0xf]  ;;  %v83_v50 = vld [vmem:[#allocation5 + $0x2c] sm:$0xf] }
  0x54   :  { %796 = vmatpush3.bf16.msra.mxu1 %v753_v41  ;;  %v762_v51 = vcombine.low %v404_v47, %v405_v48  ;;  %v356_v52 = vsel %vm987_vm1, %v82_v49, 0  ;;  %v357_v53 = vsel %vm987_vm1, %v83_v50, 0  ;;  %v114_v54 = vld [vmem:[#allocation5 + $0xa8] sm:$0xf]  ;;  %v115_v55 = vld [vmem:[#allocation5 + $0xac] sm:$0xf] }
  0x55   :  { %775 = vmatprep.subr.bf16.mxu0 %v746_v46  ;;  %v738_v56 = vcombine.low %v356_v52, %v357_v53  ;;  %v388_v57 = vsel %vm987_vm1, %v114_v54, 0  ;;  %v389_v58 = vsel %vm987_vm1, %v115_v55, 0  ;;  %v100_v59 = vld [vmem:[#allocation5 + $0x70] sm:$0xf]  ;;  %v101_v60 = vld [vmem:[#allocation5 + $0x74] sm:$0xf] }
  0x56   :  { %797 = vmatprep.subr.bf16.mxu1 %v762_v51  ;;  %v754_v61 = vcombine.low %v388_v57, %v389_v58  ;;  %v374_v62 = vsel %vm987_vm1, %v100_v59, 0  ;;  %v375_v63 = vsel %vm987_vm1, %v101_v60, 0  ;;  %v132_v2 = vld [vmem:[#allocation5 + $0xf0] sm:$0xf]  ;;  %v133_v3 = vld [vmem:[#allocation5 + $0xf4] sm:$0xf] }
  0x57   :  { %776 = vmatpush3.bf16.msra.mxu0 %v738_v56  ;;  %v747_v4 = vcombine.low %v374_v62, %v375_v63  ;;  %v406_v5 = vsel %vm993_vm3, %v132_v2, 0  ;;  %v407_v6 = vsel %vm993_vm3, %v133_v3, 0  ;;  %v84_v7 = vld [vmem:[#allocation5 + $0x30] sm:$0xf]  ;;  %v85_v8 = vld [vmem:[#allocation5 + $0x34] sm:$0xf] }
  0x58   :  { %798 = vmatpush3.bf16.msra.mxu1 %v754_v61  ;;  %v763_v9 = vcombine.low %v406_v5, %v407_v6  ;;  %v358_v10 = vsel %vm987_vm1, %v84_v7, 0  ;;  %v359_v11 = vsel %vm987_vm1, %v85_v8, 0  ;;  %v116_v12 = vld [vmem:[#allocation5 + $0xb0] sm:$0xf]  ;;  %v117_v13 = vld [vmem:[#allocation5 + $0xb4] sm:$0xf] }
  0x59   :  { %v68_v14 = vld [vmem:[#allocation2] sm:$0xff]  ;;  %777 = vmatprep.subr.bf16.mxu0 %v747_v4  ;;  %v739_v15 = vcombine.low %v358_v10, %v359_v11  ;;  %v390_v16 = vsel %vm987_vm1, %v116_v12, 0  ;;  %v391_v17 = vsel %vm987_vm1, %v117_v13, 0  ;;  %v102_v18 = vld [vmem:[#allocation5 + $0x78] sm:$0xf]  ;;  %v70_v20 = vld [vmem:[#allocation2 + $0x10] sm:$0xff] }
  0x5a   :  { %v103_v19 = vld [vmem:[#allocation5 + $0x7c] sm:$0xf]  ;;  %799 = vmatprep.subr.bf16.mxu1 %v763_v9  ;;  %v755_v21 = vcombine.low %v390_v16, %v391_v17  ;;  %v376_v22 = vsel %vm987_vm1, %v102_v18, 0  ;;  %v134_v24 = vld [vmem:[#allocation5 + $0xf8] sm:$0xf]  ;;  %v214_v39 = vsel %vm987_vm1, %v68_v14, 0 }
  0x5b   :  { %v377_v23 = vsel %vm987_vm1, %v103_v19, 0  ;;  %v135_v25 = vld [vmem:[#allocation5 + $0xfc] sm:$0xf]  ;;  %778 = vmatpush3.bf16.msra.mxu0 %v739_v15  ;;  %v408_v27 = vsel %vm993_vm3, %v134_v24, 0  ;;  %v86_v29 = vld [vmem:[#allocation5 + $0x38] sm:$0xf] }
  0x5c   :  { %v748_v26 = vcombine.low %v376_v22, %v377_v23  ;;  %v409_v28 = vsel %vm993_vm3, %v135_v25, 0  ;;  %v87_v30 = vld [vmem:[#allocation5 + $0x3c] sm:$0xf]  ;;  %800 = vmatpush3.bf16.msra.mxu1 %v755_v21  ;;  %v360_v33 = vsel %vm987_vm1, %v86_v29, 0  ;;  %v118_v35 = vld [vmem:[#allocation5 + $0xb8] sm:$0xf] }
  0x5d   :  { %v764_v32 = vcombine.low %v408_v27, %v409_v28  ;;  %v361_v34 = vsel %vm987_vm1, %v87_v30, 0  ;;  %v119_v36 = vld [vmem:[#allocation5 + $0xbc] sm:$0xf]  ;;  %v392_v37 = vsel %vm987_vm1, %v118_v35, 0  ;;  %v69_v40 = vld [vmem:[#allocation2 + $0x8] sm:$0xff]  ;;  %v216_v43 = vsel %vm987_vm1, %v70_v20, 0 }
  0x5e   :  { %779 = vmatprep.subr.bf16.mxu0 %v748_v26  ;;  %v740_v1 = vcombine.low %v360_v33, %v361_v34  ;;  %v393_v38 = vsel %vm987_vm1, %v119_v36, 0  ;;  %v71_v41 = vld [vmem:[#allocation2 + $0x18] sm:$0xff]  ;;  %v215_v44 = vsel %vm1119_vm4, %v69_v40, 0  ;;  %v729_v46 = vcombine.low %v214_v39, %v216_v43  ;;  %v728_v58 = vld [vmem:[#allocation7] ss:$0 sm:$0xff] }
  0x5f   :  { %801 = vmatprep.subr.bf16.mxu1 %v764_v32  ;;  %v756_v42 = vcombine.low %v392_v37, %v393_v38  ;;  %v217_v45 = vsel %vm1119_vm4, %v71_v41, 0  ;;  %v730_v47 = vcombine.high %v214_v39, %v216_v43 }
  0x60   :  { %780 = vmatpush3.bf16.msra.mxu0 %v740_v1  ;;  %v731_v48 = vcombine.low %v215_v44, %v217_v45  ;;  %v732_v49 = vcombine.high %v215_v44, %v217_v45 }
  0x61   :  { %802 = vmatpush3.bf16.msra.mxu1 %v756_v42  ;;  %656 = vmatprep.mubr.bf16.mxu0 %v730_v47 }
  0x62   :  { %697 = vmatprep.mubr.bf16.mxu1 %v732_v49 }
  0x63   :  { %657 = vmatmul.mubr.bf16.vlgmr.msra.gmra.mrb[0].mxu0 %v729_v46 }
  0x64   :  { %698 = vmatmul.mubr.bf16.vlgmr.msra.gmra.mrb[0].mxu1 %v731_v48 }
 0x136   :  { %v781_v50 = vpop.f32.mrb[0].mxu0 }
 0x137   :  { %v803_v51 = vpop.f32.mrb[0].mxu1  ;;  %v782_v0 = vpop.f32.mrb[1].mxu0 }
 0x138   :  { %v783_v52 = vadd.f32 %v782_v0, %v781_v50  ;;  %v804_v53 = vpop.f32.mrb[1].mxu1  ;;  %v784_v54 = vpop.f32.mrb[2].mxu0 }
 0x139   :  { %v805_v55 = vadd.f32 %v804_v53, %v803_v51  ;;  %v806_v56 = vpop.f32.mrb[2].mxu1  ;;  %v785_v57 = vpop.f32.mrb[3].mxu0 }
 0x13a   :  { %v786_v59 = vadd.f32 %v785_v57, %v784_v54  ;;  %v807_v60 = vpop.f32.mrb[3].mxu1 }
 0x13b   :  { %v700_v61 = vadd.f32 %v805_v55, %v783_v52  ;;  %v808_v62 = vadd.f32 %v807_v60, %v806_v56 }
 0x13d   :  { %v706_v63 = vadd.f32 %v728_v58, %v700_v61  ;;  %v703_v2 = vadd.f32 %v808_v62, %v786_v59 }
 0x13f   :  { %708 = vst [vmem:[#allocation8] sm:$0xff] %v706_v63  ;;  %v707_v3 = vadd.f32 %v728_v58, %v703_v2 }
 0x141   :  { %709 = vst [vmem:[#allocation8 + $0x8] sm:$0xff] %v707_v3 }
 0x142   :  { %899 = shalt.err (!%p896_p0)
}
 0x143   :  { %s900_s4 = scalar_lea.hbm %s1154_s3, 256 }
 0x144   :  { %p901_p1 = scmp.ne.s32.totalorder %s1154_s3, %s900_s4  ;;  %p904_p2 = scmp.lt.u32.totalorder %s900_s4, %s1154_s3 }
 0x146   :  { %p906_p3 = pnand %p904_p2, %p901_p1 }
 0x148   :  { %909 = shalt.err (!%p906_p3)
}
 0x149   :  { %s927_s9 = smov 128   ;;  %s928_s10 = smov 8  }
 0x14a   :  { %721 = dma.vmem_to_hbm [thread:$0]  %s716_s27, 256, %s1154_s3, [#allocation4], %s927_s9, %s927_s9, %s928_s10  }
 0x14b   :  { %914 = dma.done.wait [#allocation4], 256  }
 0x14c   :  { %915 = vsyncadd [#allocation4], 4294967040 }
 0x14d   :  { %725 = vsyncpa [#allocation3], 1 }
 0x14e   :  { %726 = vsyncpa [#allocation6], 1 }
 0x14f   :  { %727 = vsyncpa [#allocation4], 1 }

</bundles_post_ra>
